<compile_context>
chip_gen: v5e
topology: v5e:2x2
jax: 0.10.0
libtpu: 0.0.40
codegen_flags: <defaults>
</compile_context>

<pallas_src>
import math
import functools

import jax
import jax.numpy as jnp
from jax import lax
from jax.experimental import pallas as pl
from jax.experimental.pallas import tpu as pltpu


def _encoder_kernel(e_ref, bias_ref, wqkv_ref, wo_ref, o_ref):
    # e_ref:    (P, L, H)  bf16  -> P passages' embeddings
    # bias_ref: (P, 1, L)  f32   -> additive attention-mask bias over keys
    # wqkv_ref: (H, 3H)    bf16  -> fused [Wq*scale | Wk | Wv]
    # wo_ref:   (H, H)     bf16  -> output projection
    # o_ref:    (P, L, H)  f32   -> encoded passages
    P, L, H = e_ref.shape

    e = e_ref[...]                                          # (P, L, H) bf16
    e2 = e.reshape(P * L, H)

    # Fused QKV projection: single (P*L, H) x (H, 3H) MXU matmul, f32 acc.
    qkv = jnp.dot(e2, wqkv_ref[...],
                  preferred_element_type=jnp.float32)       # (P*L, 3H) f32
    q = qkv[:, 0 * H:1 * H].reshape(P, L, H)                # scale already folded in
    k = qkv[:, 1 * H:2 * H].reshape(P, L, H)
    v = qkv[:, 2 * H:3 * H].reshape(P, L, H)

    # Scores: batched contraction on the hidden dim (no explicit k.T).
    s = lax.dot_general(
        q.astype(jnp.bfloat16), k.astype(jnp.bfloat16),
        dimension_numbers=(((2,), (2,)), ((0,), (0,))),
        preferred_element_type=jnp.float32)                 # (P, L, L) f32
    s = s + bias_ref[...]                                   # (P,1,L) broadcasts over queries

    # Softmax kept in f32; divide replaced by EUP reciprocal.
    m = jnp.max(s, axis=-1, keepdims=True)
    ex = jnp.exp(s - m)
    denom = jnp.sum(ex, axis=-1, keepdims=True)
    p = ex * pl.reciprocal(denom, approx=True)              # (P, L, L) f32

    ctx = jnp.einsum("pqk,pkd->pqd",
                     p.astype(jnp.bfloat16), v.astype(jnp.bfloat16),
                     preferred_element_type=jnp.float32)    # (P, L, H) f32

    out = jnp.dot(ctx.reshape(P * L, H).astype(jnp.bfloat16), wo_ref[...],
                  preferred_element_type=jnp.float32).reshape(P, L, H)
    out = out + e.astype(jnp.float32)                       # residual

    o_ref[...] = out.astype(o_ref.dtype)


def _choose_passages_per_block(bn, seq_len):
    # Target M = P*L >= 256 MXU rows (saturates the 256-wide v6e/v7x MXU;
    # also >= 128 for v5e), capped by the number of passages available.
    p = max(1, 256 // max(seq_len, 1))
    return max(1, min(p, bn))


def _encode_passages_pallas(emb, bias, wqkv, wo):
    # emb:  (BN, L, H) bf16 ; bias: (BN, 1, L) f32
    # wqkv: (H, 3H)    bf16 ; wo:   (H, H)     bf16
    bn, L, H = emb.shape
    P = _choose_passages_per_block(bn, L)
    bn_pad = ((bn + P - 1) // P) * P
    if bn_pad != bn:
        # Dummy passages: zero embeddings + zero (fully open) mask bias; rows
        # stay finite and are sliced off below.
        emb = jnp.pad(emb, ((0, bn_pad - bn), (0, 0), (0, 0)))
        bias = jnp.pad(bias, ((0, bn_pad - bn), (0, 0), (0, 0)))

    grid = (bn_pad // P,)

    flops = 2 * bn_pad * (4 * L * H * H + 2 * L * L * H)
    bytes_accessed = (emb.size * emb.dtype.itemsize
                      + bias.size * bias.dtype.itemsize
                      + wqkv.size * wqkv.dtype.itemsize
                      + wo.size * wo.dtype.itemsize
                      + bn_pad * L * H * 4)
    cost = pl.CostEstimate(flops=flops,
                           transcendentals=bn_pad * L * L,
                           bytes_accessed=bytes_accessed)

    out = pl.pallas_call(
        _encoder_kernel,
        out_shape=jax.ShapeDtypeStruct((bn_pad, L, H), jnp.float32),
        grid_spec=pltpu.PrefetchScalarGridSpec(
            num_scalar_prefetch=0,
            grid=grid,
            in_specs=[
                pl.BlockSpec((P, L, H), lambda i: (i, 0, 0)),
                pl.BlockSpec((P, 1, L), lambda i: (i, 0, 0)),
                pl.BlockSpec((H, 3 * H), lambda i: (0, 0)),
                pl.BlockSpec((H, H), lambda i: (0, 0)),
            ],
            out_specs=pl.BlockSpec((P, L, H), lambda i: (i, 0, 0)),
        ),
        compiler_params=pltpu.CompilerParams(
            dimension_semantics=("parallel",)),
        cost_estimate=cost,
    )(emb, bias, wqkv, wo)

    return out[:bn]


def make_params(vocab_size, hidden, key):
    k_emb, k_q, k_k, k_v, k_o = jax.random.split(key, 5)
    s = 1.0 / math.sqrt(hidden)
    return {
        "emb": jax.random.normal(k_emb, (vocab_size, hidden), jnp.float32) * 0.1,
        "wq": jax.random.normal(k_q, (hidden, hidden), jnp.float32) * s,
        "wk": jax.random.normal(k_k, (hidden, hidden), jnp.float32) * s,
        "wv": jax.random.normal(k_v, (hidden, hidden), jnp.float32) * s,
        "wo": jax.random.normal(k_o, (hidden, hidden), jnp.float32) * s,
    }


@functools.partial(jax.jit, static_argnames=("n_passages",))
def encoder_wrapper_forward(input_ids, attention_mask, params, n_passages):
    """FiD EncoderWrapper.forward: (B, N*L) -> (B, N*L, H)."""
    if input_ids.ndim == 3:  # mirrors the torch .view when dim() == 3
        input_ids = input_ids.reshape(input_ids.shape[0], -1)
        attention_mask = attention_mask.reshape(attention_mask.shape[0], -1)

    bsz, total_length = input_ids.shape
    passage_length = total_length // n_passages

    ids = input_ids.reshape(bsz * n_passages, passage_length)
    mask = attention_mask.reshape(bsz * n_passages, passage_length)

    hidden = params["emb"].shape[-1]
    scale = 1.0 / math.sqrt(hidden)

    # Glue: embedding gather in plain JAX (data-dependent gather).
    # TODO(synk): move the gather into the kernel (scalar-prefetched ids +
    # manual DMA row gather from an HBM-resident table) to avoid the extra
    # HBM round trip of the (BN, L, H) activation.
    emb = params["emb"][ids].astype(jnp.bfloat16)                  # (BN, L, H)
    bias = jnp.where(mask > 0, 0.0, -1e9).astype(jnp.float32)[:, None, :]  # (BN,1,L)

    # Fused QKV weight; 1/sqrt(H) score scale folded into the Q columns.
    wqkv = jnp.concatenate(
        [params["wq"] * scale, params["wk"], params["wv"]], axis=1
    ).astype(jnp.bfloat16)                                         # (H, 3H)
    wo = params["wo"].astype(jnp.bfloat16)

    enc = _encode_passages_pallas(emb, bias, wqkv, wo)             # (BN, L, H)

    # outputs[0].view(bsz, n_passages * passage_length, -1)
    return enc.reshape(bsz, n_passages * passage_length, -1)


def _reference_forward(input_ids, attention_mask, params, n_passages):
    """Pure-JAX f32 reference for correctness check."""
    if input_ids.ndim == 3:
        input_ids = input_ids.reshape(input_ids.shape[0], -1)
        attention_mask = attention_mask.reshape(attention_mask.shape[0], -1)
    bsz, total = input_ids.shape
    L = total // n_passages
    ids = input_ids.reshape(bsz * n_passages, L)
    mask = attention_mask.reshape(bsz * n_passages, L)
    e = params["emb"][ids]
    q = e @ params["wq"]
    k = e @ params["wk"]
    v = e @ params["wv"]
    s = jnp.einsum("bqd,bkd->bqk", q, k) / math.sqrt(e.shape[-1])
    s = s + jnp.where(mask > 0, 0.0, -1e9)[:, None, :]
    p = jax.nn.softmax(s, axis=-1)
    out = jnp.einsum("bqk,bkd->bqd", p, v) @ params["wo"] + e
    return out.reshape(bsz, n_passages * L, -1)


if __name__ == "__main__":
    def run_case(B, N, L, H, V, key):
        k_ids, k_mask, k_params = jax.random.split(key, 3)
        params = make_params(V, H, k_params)
        input_ids = jax.random.randint(k_ids, (B, N * L), 0, V, dtype=jnp.int32)
        # Random 0/1 mask, first token of every passage kept unmasked.
        attention_mask = (jax.random.uniform(k_mask, (B, N, L)) > 0.3).astype(jnp.int32)
        attention_mask = attention_mask.at[:, :, 0].set(1).reshape(B, N * L)

        out = encoder_wrapper_forward(input_ids, attention_mask, params,
                                      n_passages=N)
        out = jax.block_until_ready(out)

        ref = _reference_forward(input_ids, attention_mask, params, N)
        assert out.shape == (B, N * L, H), out.shape
        max_err = float(jnp.max(jnp.abs(out - ref)))
        assert jnp.allclose(out, ref, atol=2e-2, rtol=2e-2), (
            "mismatch vs reference", max_err)

    key = jax.random.PRNGKey(0)
    k1, k2 = jax.random.split(key)

    # Small config: all passages fit one grid step (P = BN = 6).
    run_case(B=2, N=3, L=8, H=32, V=50, key=k1)
    # Config exercising multi-step grid + passage padding (BN=34 -> P=32, pad to 64).
    run_case(B=2, N=17, L=8, H=32, V=50, key=k2)

    print("KERNEL_OK")
</pallas_src>

<mosaic_0001>
module attributes {stable_mosaic.version = 11 : i64} {
  func.func @_encoder_kernel(%arg0: i32, %arg1: memref<6x8x32xbf16, #tpu.memory_space<vmem>>, %arg2: memref<6x1x8xf32, #tpu.memory_space<vmem>>, %arg3: memref<32x96xbf16, #tpu.memory_space<vmem>>, %arg4: memref<32x32xbf16, #tpu.memory_space<vmem>>, %arg5: memref<6x8x32xf32, #tpu.memory_space<vmem>>) attributes {dimension_semantics = [#tpu.dimension_semantics<parallel>], iteration_bounds = array<i64: 1>, scalar_prefetch = 0 : i64, scratch_operands = 0 : i64, tpu.core_type = #tpu.core_type<tc>, window_params = [{transform_indices = @transform_0, window_bounds = array<i64: 6, 8, 32>}, {transform_indices = @transform_1, window_bounds = array<i64: 6, 1, 8>}, {pipeline_mode = #tpu.pipeline_mode<synchronous>, transform_indices = @transform_2, window_bounds = array<i64: 32, 96>}, {pipeline_mode = #tpu.pipeline_mode<synchronous>, transform_indices = @transform_3, window_bounds = array<i64: 32, 32>}, {transform_indices = @transform_4, window_bounds = array<i64: 6, 8, 32>}]} {
    %c0 = arith.constant 0 : index
    %c0_0 = arith.constant 0 : index
    %c0_1 = arith.constant 0 : index
    %0 = vector.load %arg1[%c0, %c0_0, %c0_1] : memref<6x8x32xbf16, #tpu.memory_space<vmem>>, vector<6x8x32xbf16>
    %1 = vector.shape_cast %0 : vector<6x8x32xbf16> to vector<48x32xbf16>
    %c0_2 = arith.constant 0 : index
    %c0_3 = arith.constant 0 : index
    %2 = vector.load %arg3[%c0_2, %c0_3] : memref<32x96xbf16, #tpu.memory_space<vmem>>, vector<32x96xbf16>
    %cst = arith.constant dense<0.000000e+00> : vector<48x96xf32>
    %3 = tpu.matmul %1, %2, %cst {dimension_numbers = #tpu.dot_dimension_numbers<[1], [0], [0], [1], [0, 0, 1, 1], [], []>} : vector<48x32xbf16>, vector<32x96xbf16>, vector<48x96xf32> -> vector<48x96xf32>
    %4 = vector.extract_strided_slice %3 {offsets = [0, 0], sizes = [48, 32], strides = [1, 1]} : vector<48x96xf32> to vector<48x32xf32>
    %5 = vector.shape_cast %4 : vector<48x32xf32> to vector<6x8x32xf32>
    %6 = vector.extract_strided_slice %3 {offsets = [0, 32], sizes = [48, 32], strides = [1, 1]} : vector<48x96xf32> to vector<48x32xf32>
    %7 = vector.shape_cast %6 : vector<48x32xf32> to vector<6x8x32xf32>
    %8 = vector.extract_strided_slice %3 {offsets = [0, 64], sizes = [48, 32], strides = [1, 1]} : vector<48x96xf32> to vector<48x32xf32>
    %9 = vector.shape_cast %8 : vector<48x32xf32> to vector<6x8x32xf32>
    %10 = arith.truncf %5 : vector<6x8x32xf32> to vector<6x8x32xbf16>
    %11 = arith.truncf %7 : vector<6x8x32xf32> to vector<6x8x32xbf16>
    %cst_4 = arith.constant dense<0.000000e+00> : vector<6x8x8xf32>
    %12 = tpu.matmul %10, %11, %cst_4 {dimension_numbers = #tpu.dot_dimension_numbers<[2], [2], [1], [1], [0, 0, 0, 1, 1, 1], [0], [0]>} : vector<6x8x32xbf16>, vector<6x8x32xbf16>, vector<6x8x8xf32> -> vector<6x8x8xf32>
    %c0_5 = arith.constant 0 : index
    %c0_6 = arith.constant 0 : index
    %c0_7 = arith.constant 0 : index
    %13 = vector.load %arg2[%c0_5, %c0_6, %c0_7] : memref<6x1x8xf32, #tpu.memory_space<vmem>>, vector<6x1x8xf32>
    %14 = vector.broadcast %13 : vector<6x1x8xf32> to vector<6x8x8xf32>
    %15 = arith.addf %12, %14 : vector<6x8x8xf32>
    %cst_8 = arith.constant dense<0xFF800000> : vector<6x8xf32>
    %16 = vector.multi_reduction <maximumf>, %15, %cst_8 [2] : vector<6x8x8xf32> to vector<6x8xf32>
    %17 = vector.shape_cast %16 : vector<6x8xf32> to vector<6x8x1xf32>
    %18 = vector.broadcast %17 : vector<6x8x1xf32> to vector<6x8x8xf32>
    %19 = arith.subf %15, %18 : vector<6x8x8xf32>
    %20 = math.exp %19 : vector<6x8x8xf32>
    %cst_9 = arith.constant dense<0.000000e+00> : vector<6x8xf32>
    %21 = vector.multi_reduction <add>, %20, %cst_9 [2] : vector<6x8x8xf32> to vector<6x8xf32>
    %22 = vector.shape_cast %21 : vector<6x8xf32> to vector<6x8x1xf32>
    %23 = tpu.reciprocal %22 {approx = true} : vector<6x8x1xf32> -> vector<6x8x1xf32>
    %24 = vector.broadcast %23 : vector<6x8x1xf32> to vector<6x8x8xf32>
    %25 = arith.mulf %20, %24 : vector<6x8x8xf32>
    %26 = arith.truncf %25 : vector<6x8x8xf32> to vector<6x8x8xbf16>
    %27 = arith.truncf %9 : vector<6x8x32xf32> to vector<6x8x32xbf16>
    "tpu.trace_start"() <{level = 10 : i32, message = "pqk,pkd->pqd"}> : () -> ()
    %cst_10 = arith.constant dense<0.000000e+00> : vector<6x8x32xf32>
    %28 = tpu.matmul %26, %27, %cst_10 {dimension_numbers = #tpu.dot_dimension_numbers<[2], [1], [1], [2], [0, 0, 0, 1, 1, 2], [0], [0]>} : vector<6x8x8xbf16>, vector<6x8x32xbf16>, vector<6x8x32xf32> -> vector<6x8x32xf32>
    "tpu.trace_stop"() : () -> ()
    %29 = vector.shape_cast %28 : vector<6x8x32xf32> to vector<48x32xf32>
    %30 = arith.truncf %29 : vector<48x32xf32> to vector<48x32xbf16>
    %c0_11 = arith.constant 0 : index
    %c0_12 = arith.constant 0 : index
    %31 = vector.load %arg4[%c0_11, %c0_12] : memref<32x32xbf16, #tpu.memory_space<vmem>>, vector<32x32xbf16>
    %cst_13 = arith.constant dense<0.000000e+00> : vector<48x32xf32>
    %32 = tpu.matmul %30, %31, %cst_13 {dimension_numbers = #tpu.dot_dimension_numbers<[1], [0], [0], [1], [0, 0, 1, 1], [], []>} : vector<48x32xbf16>, vector<32x32xbf16>, vector<48x32xf32> -> vector<48x32xf32>
    %33 = vector.shape_cast %32 : vector<48x32xf32> to vector<6x8x32xf32>
    %34 = arith.extf %0 : vector<6x8x32xbf16> to vector<6x8x32xf32>
    %35 = arith.addf %33, %34 : vector<6x8x32xf32>
    %c0_14 = arith.constant 0 : index
    %c0_15 = arith.constant 0 : index
    %c0_16 = arith.constant 0 : index
    %36 = vector.load %arg5[%c0_14, %c0_15, %c0_16] : memref<6x8x32xf32, #tpu.memory_space<vmem>>, vector<6x8x32xf32>
    tpu.vector_store %arg5[%c0_14, %c0_15, %c0_16], %35 {strides = array<i32>} : memref<6x8x32xf32, #tpu.memory_space<vmem>>, vector<6x8x32xf32>,
    return
  }
  func.func @transform_0(%arg0: i32) -> (i32, i32, i32) {
    %c0_i32 = arith.constant 0 : i32
    %c0_i32_0 = arith.constant 0 : i32
    %c0_i32_1 = arith.constant 0 : i32
    return %arg0, %c0_i32, %c0_i32_0 : i32, i32, i32
  }
  func.func @transform_1(%arg0: i32) -> (i32, i32, i32) {
    %c0_i32 = arith.constant 0 : i32
    %c0_i32_0 = arith.constant 0 : i32
    %c0_i32_1 = arith.constant 0 : i32
    return %arg0, %c0_i32, %c0_i32_0 : i32, i32, i32
  }
  func.func @transform_2(%arg0: i32) -> (i32, i32) {
    %c0_i32 = arith.constant 0 : i32
    %c0_i32_0 = arith.constant 0 : i32
    %c0_i32_1 = arith.constant 0 : i32
    return %c0_i32, %c0_i32_0 : i32, i32
  }
  func.func @transform_3(%arg0: i32) -> (i32, i32) {
    %c0_i32 = arith.constant 0 : i32
    %c0_i32_0 = arith.constant 0 : i32
    %c0_i32_1 = arith.constant 0 : i32
    return %c0_i32, %c0_i32_0 : i32, i32
  }
  func.func @transform_4(%arg0: i32) -> (i32, i32, i32) {
    %c0_i32 = arith.constant 0 : i32
    %c0_i32_0 = arith.constant 0 : i32
    %c0_i32_1 = arith.constant 0 : i32
    return %arg0, %c0_i32, %c0_i32_0 : i32, i32, i32
  }
}

</mosaic_0001>

<bundles_post_ra>
// kernel: encoder_wrapper_forward.1
= control target key start
LH: loop header
LB: loop body
LE: loop exit
PB: predicated region body
PF: predicated region fallthrough
CT: control target
= control target key end

     0   :  { %s825_s0 = inlined_call_operand.vmem [shape: bf16[6,8,32], index: 0, kind: input, shape index: {}]   ;;  %s826_s1 = inlined_call_operand.vmem [shape: f32[6,1,8], index: 1, kind: input, shape index: {}]   ;;  %s827_s2 = inlined_call_operand.vmem [shape: bf16[32,96], index: 2, kind: input, shape index: {}]   ;;  %s828_s3 = inlined_call_operand.vmem [shape: bf16[32,32], index: 3, kind: input, shape index: {}]   ;;  %s829_s4 = inlined_call_operand.hbm [shape: f32[6,8,32], index: 4, kind: output, shape index: {}]  }
   0x1   :  { %v602_v0 = vld [vmem:[%s827_s2 + $0x8] sm:$0xff]  ;;  %v601_v1 = vld [vmem:[%s827_s2] sm:$0xff] }
   0x2   :  { %72 = vmatpush.bf16.msra.mxu0 %v602_v0 }
   0x3   :  { %9 = vsyncpa [#allocation3], 0  ;;  %v598_v2 = vld [vmem:[%s825_s0] sm:$0xff]  ;;  %vm56_vm0 = vcmask 261120   ;;  %v599_v3 = vld [vmem:[%s825_s0 + $0x8] sm:$0xff]  ;;  %s666_s2 = smov 96  }
   0x4   :  { %v600_v4 = vld [vmem:[%s825_s0 + $0x10] sm:$0xff]  ;;  %v610_v41 = vld [vmem:[%s826_s1 + $0x1] ss:$0 sm:$0xff]  ;;  %v611_v42 = vld [vmem:[%s826_s1] ss:$0 sm:$0xff]  ;;  %vm264_vm1 = vcmask 64512  }
   0x5   :  { %v612_v43 = vld [vmem:[%s826_s1 + $0x2] ss:$0 sm:$0xff]  ;;  %v613_v53 = vld [vmem:[%s826_s1 + $0x5] ss:$0 sm:$0xff]  ;;  %v615_v60 = vld [vmem:[%s826_s1 + $0x3] ss:$0 sm:$0xff] }
   0x6   :  { %73 = vmatpush.bf16.msra.mxu0 %v601_v1  ;;  %s667_s9 = smov 64   ;;  %vm342_vm2 = vcmask 1043456   ;;  %s668_s20 = smov [#allocation2]  }
   0x7   :  { %s538_s21 = sshll.u32 %s668_s20, 4  ;;  %s540_s24 = sshll.u32 %s829_s4, 4  ;;  %s539_s21 = int_to_ptr.vmem [resolvable:$true] %s538_s21  ;;  %s541_s24 = int_to_ptr.hbm [resolvable:$true] %s540_s24 }
   0x9   :  { %572 = vmatmul.msk.bf16.vlgmr.msra.gmra.mxu0 %vm56_vm0, %v598_v2 }
  0x19   :  { %573 = vmatmul.msk.bf16.gmra.mxu0 %vm56_vm0, %v599_v3 }
  0x29   :  { %574 = vmatmul.msk.bf16.gmra.mxu0 %vm56_vm0, %v600_v4  ;;  %v614_v4 = vld [vmem:[%s826_s1 + $0x4] ss:$0 sm:$0xff] }
  0x86   :  { %v75_v5 = vpop.f32.mrf.mxu0 }
  0x87   :  { %v90_v9 = vpack.c.bf16 %v75_v5, %v75_v5 }
  0x89   :  { %v121_v12 = vunpack.c.l.b16 %v90_v9 }
  0x8b   :  { %v717_v15 = vpack.c.b16 %v121_v12, %v121_v12 }
  0x8e   :  { %v77_v6 = vpop.f32.mrf.mxu0 }
  0x8f   :  { %v91_v7 = vpack.c.bf16 %v77_v6, %v77_v6 }
  0x91   :  { %v145_v8 = vunpack.c.l.b16 %v91_v7 }
  0x93   :  { %v714_v10 = vpack.c.b16 %v145_v8, %v145_v8 }
  0x95   :  { %147 = vrot.lane.b32.xlu0 %v714_v10, %s666_s2 }
  0x96   :  { %v80_v11 = vpop.f32.mrf.mxu0 }
  0x97   :  { %v92_v13 = vpack.c.bf16 %v80_v11, %v80_v11 }
  0x99   :  { %v169_v14 = vunpack.c.l.b16 %v92_v13 }
  0x9b   :  { %v719_v16 = vpack.c.b16 %v169_v14, %v169_v14 }
  0x9d   :  { %123 = vrot.lane.b32.xlu0 %v717_v15, %s666_s2  ;;  %171 = vrot.lane.b32.xlu1 %v719_v16, %s666_s2 }
  0x9e   :  { %v82_v17 = vpop.f32.mrf.mxu0 }
  0x9f   :  { %v93_v18 = vpack.c.bf16 %v82_v17, %v82_v17 }
  0xa1   :  { %v193_v19 = vunpack.c.l.b16 %v93_v18 }
  0xa3   :  { %v723_v20 = vpack.c.b16 %v193_v19, %v193_v19 }
  0xa5   :  { %195 = vrot.lane.b32.xlu1 %v723_v20, %s666_s2 }
  0xa6   :  { %v85_v21 = vpop.f32.mrf.mxu0 }
  0xa7   :  { %v94_v24 = vpack.c.bf16 %v85_v21, %v85_v21 }
  0xa9   :  { %v217_v27 = vunpack.c.l.b16 %v94_v24 }
  0xab   :  { %v729_v28 = vpack.c.b16 %v217_v27, %v217_v27 }
  0xae   :  { %v87_v22 = vpop.f32.mrf.mxu0 }
  0xaf   :  { %v95_v23 = vpack.c.bf16 %v87_v22, %v87_v22 }
  0xb1   :  { %v241_v25 = vunpack.c.l.b16 %v95_v23 }
  0xb3   :  { %v726_v26 = vpack.c.b16 %v241_v25, %v241_v25 }
  0xb5   :  { %243 = vrot.lane.b32.xlu2 %v726_v26, %s666_s2 }
  0xbd   :  { %219 = vrot.lane.b32.xlu2 %v729_v28, %s666_s2  ;;  %s669_s2 = smov 128  }
 0x107   :  { %v148_v29 = vpop.permute.xlu0 %147 }
 0x108   :  { %v153_v30 = vsel %vm56_vm0, %v148_v29, 0 }
 0x109   :  { %162 = vmatpush.bf16.xpose.msra.mxu2 %v153_v30 }
 0x10f   :  { %v124_v31 = vpop.permute.xlu0 %123  ;;  %v172_v32 = vpop.permute.xlu1 %171 }
 0x110   :  { %v244_v33 = vpop.permute.xlu2 %243  ;;  %576 = vmatmul.msk.bf16.vlgmr.msra.gmra.mxu2 %vm56_vm0, %v91_v7  ;;  %v129_v34 = vsel %vm56_vm0, %v124_v31, 0  ;;  %v177_v35 = vsel %vm56_vm0, %v172_v32, 0 }
 0x111   :  { %138 = vmatpush.bf16.xpose.msra.mxu1 %v129_v34  ;;  %186 = vmatpush.bf16.xpose.msrb.mxu0 %v177_v35  ;;  %v249_v36 = vsel %vm56_vm0, %v244_v33, 0 }
 0x112   :  { %258 = vmatpush.bf16.xpose.msra.mxu3 %v249_v36 }
 0x117   :  { %v196_v37 = vpop.permute.xlu1 %195 }
 0x118   :  { %v220_v38 = vpop.permute.xlu2 %219  ;;  %575 = vmatmul.msk.bf16.vlgmr.msra.gmra.mxu1 %vm56_vm0, %v90_v9  ;;  %577 = vmatmul.msk.bf16.vlgmr.msrb.gmra.mxu0 %vm56_vm0, %v92_v13  ;;  %v201_v39 = vsel %vm56_vm0, %v196_v37, 0 }
 0x119   :  { %580 = vmatmul.msk.bf16.vlgmr.msra.gmra.mxu3 %vm56_vm0, %v95_v23  ;;  %v225_v40 = vsel %vm56_vm0, %v220_v38, 0  ;;  %210 = vmatpush.bf16.xpose.msrb.mxu1 %v201_v39 }
 0x11a   :  { %234 = vmatpush.bf16.xpose.msrb.mxu2 %v225_v40 }
 0x121   :  { %579 = vmatmul.msk.bf16.vlgmr.msrb.gmra.mxu2 %vm56_vm0, %v94_v24 }
 0x128   :  { %578 = vmatmul.msk.bf16.vlgmr.msrb.gmra.mxu1 %vm56_vm0, %v93_v18 }
 0x193   :  { %v164_v44 = vpop.f32.mrf.mxu2 }
 0x194   :  { %v165_v45 = vadd.f32 %v610_v41, %v164_v44 }
 0x195   :  { %v140_v46 = vpop.f32.mrf.mxu1  ;;  %v188_v47 = vpop.f32.mrf.mxu0 }
 0x196   :  { %v141_v48 = vadd.f32 %v611_v42, %v140_v46  ;;  %v189_v49 = vadd.f32 %v612_v43, %v188_v47  ;;  %v268_v50 = vsel %vm264_vm1, %v165_v45, -inf }
 0x197   :  { %269 = vmax.xlane.f32.xlu0 %v268_v50 }
 0x198   :  { %v265_v51 = vsel %vm264_vm1, %v141_v48, -inf  ;;  %v271_v52 = vsel %vm264_vm1, %v189_v49, -inf }
 0x199   :  { %266 = vmax.xlane.f32.xlu1 %v265_v51  ;;  %272 = vmax.xlane.f32.xlu2 %v271_v52 }
 0x19b   :  { %v166_v54 = vpop.f32.mrf.mxu2 }
 0x19c   :  { %v260_v55 = vpop.f32.mrf.mxu3 }
 0x19d   :  { %v261_v56 = vadd.f32 %v613_v53, %v260_v55  ;;  %v142_v57 = vpop.f32.mrf.mxu1  ;;  %v190_v58 = vpop.f32.mrf.mxu0 }
 0x19f   :  { %v280_v59 = vsel %vm264_vm1, %v261_v56, -inf }
 0x1a0   :  { %281 = vmax.xlane.f32.xlu0 %v280_v59 }
 0x1a4   :  { %v236_v61 = vpop.f32.mrf.mxu2  ;;  %v262_v62 = vpop.f32.mrf.mxu3 }
 0x1a5   :  { %v212_v63 = vpop.f32.mrf.mxu1  ;;  %v237_v5 = vadd.f32 %v614_v4, %v236_v61 }
 0x1a6   :  { %v213_v0 = vadd.f32 %v615_v60, %v212_v63 }
 0x1a7   :  { %v277_v6 = vsel %vm264_vm1, %v237_v5, -inf }
 0x1a8   :  { %v274_v1 = vsel %vm264_vm1, %v213_v0, -inf }
 0x1a9   :  { %275 = vmax.xlane.f32.xlu2 %v274_v1 }
 0x1ac   :  { %v238_v2 = vpop.f32.mrf.mxu2 }
 0x1ad   :  { %v214_v3 = vpop.f32.mrf.mxu1 }
 0x1b2   :  { %359 = vrot.lane.b32.xlu1 %v714_v10, %s667_s9 }
 0x1dc   :  { %278 = vmax.xlane.f32.xlu1 %v277_v6 }
 0x1f5   :  { %401 = vrot.lane.b32.xlu1 %v723_v20, %s667_s9 }
 0x20a   :  { %v270_v7 = vpop.xlane.xlu0 %269 }
 0x20b   :  { %v284_v8 = vsub.f32 %v165_v45, %v270_v7 }
 0x20c   :  { %v267_v9 = vpop.xlane.xlu1 %266  ;;  %v273_v21 = vpop.xlane.xlu2 %272 }
 0x20d   :  { %v291_v11 = vmul.f32 1.442695, %v284_v8  ;;  %v283_v12 = vsub.f32 %v141_v48, %v267_v9  ;;  %v285_v23 = vsub.f32 %v189_v49, %v273_v21  ;;  %v604_v9 = vld [vmem:[%s828_s3 + $0x8] sm:$0xff] }
 0x20f   :  { %616 = vpow2.f32 %v291_v11  ;;  %v289_v13 = vmul.f32 1.442695, %v283_v12  ;;  %v293_v25 = vmul.f32 1.442695, %v285_v23  ;;  %v603_v11 = vld [vmem:[%s828_s3] sm:$0xff] }
 0x211   :  { %618 = vpow2.f32 %v289_v13 }
 0x212   :  { %620 = vpow2.f32 %v293_v25 }
 0x213   :  { %v282_v22 = vpop.xlane.xlu0 %281 }
 0x214   :  { %v288_v24 = vsub.f32 %v261_v56, %v282_v22 }
 0x215   :  { %v617_v10 = vpop.eup %616 }
 0x216   :  { %v304_v14 = vsel %vm264_vm1, %v617_v10, 0.0  ;;  %v299_v27 = vmul.f32 1.442695, %v288_v24 }
 0x217   :  { %v619_v17 = vpop.eup %618  ;;  %305 = vadd.xlane.f32.xlu2 %v304_v14 }
 0x218   :  { %v301_v18 = vsel %vm264_vm1, %v619_v17, 0.0  ;;  %622 = vpow2.f32 %v299_v27  ;;  %v621_v35 = vpop.eup %620 }
 0x219   :  { %302 = vadd.xlane.f32.xlu0 %v301_v18 }
 0x21c   :  { %v276_v29 = vpop.xlane.xlu2 %275 }
 0x21d   :  { %v286_v30 = vsub.f32 %v213_v0, %v276_v29 }
 0x21e   :  { %v623_v36 = vpop.eup %622 }
 0x21f   :  { %v295_v33 = vmul.f32 1.442695, %v286_v30  ;;  %v19_v30 = vld [vmem:[%s825_s0] sm:$0xff]  }
 0x224   :  { %v360_v19 = vpop.permute.xlu1 %359 }
 0x225   :  { %v365_v20 = vsel %vm342_vm2, %v360_v19, 0 }
 0x226   :  { %374 = vmatpush.bf16.msra.mxu2 %v365_v20 }
 0x22d   :  { %380 = vrot.lane.b32.xlu0 %v719_v16, %s667_s9  ;;  %v316_v16 = vsel %vm264_vm1, %v623_v36, 0.0 }
 0x22f   :  { %337 = vrot.lane.b32.xlu2 %v717_v15, %s667_s9  ;;  %v307_v15 = vsel %vm264_vm1, %v621_v35, 0.0 }
 0x24f   :  { %v279_v31 = vpop.xlane.xlu1 %278 }
 0x250   :  { %v287_v32 = vsub.f32 %v237_v5, %v279_v31  ;;  %v516_v31 = vunpack.c.l.bf16 %v19_v30 }
 0x252   :  { %v297_v34 = vmul.f32 1.442695, %v287_v32 }
 0x254   :  { %624 = vpow2.f32 %v297_v34  ;;  %v517_v34 = vunpack.c.h.bf16 %v19_v30 }
 0x255   :  { %626 = vpow2.f32 %v295_v33 }
 0x257   :  { %308 = vadd.xlane.f32.xlu0 %v307_v15  ;;  %v21_v15 = vld [vmem:[%s825_s0 + $0x8] sm:$0xff]  }
 0x258   :  { %317 = vadd.xlane.f32.xlu2 %v316_v16  ;;  %v518_v16 = vunpack.c.l.bf16 %v21_v15 }
 0x25a   :  { %v625_v37 = vpop.eup %624 }
 0x25b   :  { %v627_v38 = vpop.eup %626  ;;  %v313_v39 = vsel %vm264_vm1, %v625_v37, 0.0 }
 0x25c   :  { %314 = vadd.xlane.f32.xlu1 %v313_v39  ;;  %v310_v40 = vsel %vm264_vm1, %v627_v38, 0.0  ;;  %v519_v39 = vunpack.c.h.bf16 %v21_v15 }
 0x25f   :  { %311 = vadd.xlane.f32.xlu0 %v310_v40 }
 0x267   :  { %v402_v41 = vpop.permute.xlu1 %401 }
 0x268   :  { %v407_v42 = vsel %vm342_vm2, %v402_v41, 0 }
 0x269   :  { %416 = vmatpush.bf16.msra.mxu0 %v407_v42  ;;  %v23_v42 = vld [vmem:[%s825_s0 + $0x10] sm:$0xff]   ;;  %s670_s0 = smov 8  }
 0x273   :  { %443 = vrot.lane.b32.xlu0 %v726_v26, %s667_s9 }
 0x27b   :  { %422 = vrot.lane.b32.xlu0 %v729_v28, %s667_s9 }
 0x28a   :  { %v306_v43 = vpop.xlane.xlu2 %305 }
 0x28b   :  { %628 = vrcp.f32 %v306_v43  ;;  %v520_v43 = vunpack.c.l.bf16 %v23_v42 }
 0x28c   :  { %v303_v44 = vpop.xlane.xlu0 %302 }
 0x28d   :  { %630 = vrcp.f32 %v303_v44 }
 0x291   :  { %v629_v45 = vpop.eup %628 }
 0x292   :  { %v326_v46 = vmul.f32 %v629_v45, %v617_v10  ;;  %v338_v47 = vpop.permute.xlu2 %337 }
 0x293   :  { %v631_v48 = vpop.eup %630  ;;  %v344_v49 = vsel %vm342_vm2, %v338_v47, 0 }
 0x294   :  { %v332_v50 = vpack.c.bf16 %v326_v46, %v326_v46  ;;  %v325_v51 = vmul.f32 %v631_v48, %v619_v17  ;;  %353 = vmatpush.bf16.msra.mxu1 %v344_v49  ;;  %v521_v46 = vunpack.c.h.bf16 %v23_v42 }
 0x296   :  { %v331_v52 = vpack.c.bf16 %v325_v51, %v325_v51  ;;  %582 = vmatmul.msk.bf16.vlgmr.msra.gmra.mxu2 %vm264_vm1, %v332_v50 }
 0x298   :  { %581 = vmatmul.msk.bf16.vlgmr.msra.gmra.mxu1 %vm264_vm1, %v331_v52 }
 0x29f   :  { %v381_v26 = vpop.permute.xlu0 %380 }
 0x2a0   :  { %v386_v28 = vsel %vm342_vm2, %v381_v26, 0 }
 0x2a1   :  { %395 = vmatpush.bf16.msrb.mxu3 %v386_v28 }
 0x2a5   :  { %498 = vmatpush.bf16.msra.mxu3 %v604_v9 }
 0x2a9   :  { %499 = vmatpush.bf16.msra.mxu3 %v603_v11 }
 0x2ca   :  { %v309_v53 = vpop.xlane.xlu0 %308 }
 0x2cb   :  { %632 = vrcp.f32 %v309_v53  ;;  %v318_v58 = vpop.xlane.xlu2 %317 }
 0x2cf   :  { %v315_v62 = vpop.xlane.xlu1 %314 }
 0x2d1   :  { %v633_v54 = vpop.eup %632 }
 0x2d2   :  { %v327_v55 = vmul.f32 %v633_v54, %v621_v35  ;;  %v312_v56 = vpop.xlane.xlu0 %311 }
 0x2d3   :  { %634 = vrcp.f32 %v312_v56 }
 0x2d4   :  { %v333_v57 = vpack.c.bf16 %v327_v55, %v327_v55  ;;  %636 = vrcp.f32 %v318_v58 }
 0x2d5   :  { %638 = vrcp.f32 %v315_v62 }
 0x2d6   :  { %583 = vmatmul.msk.bf16.vlgmr.msrb.gmra.mxu3 %vm264_vm1, %v333_v57 }
 0x2d9   :  { %v635_v59 = vpop.eup %634 }
 0x2da   :  { %v328_v60 = vmul.f32 %v635_v59, %v627_v38  ;;  %v637_v63 = vpop.eup %636 }
 0x2db   :  { %v330_v0 = vmul.f32 %v637_v63, %v623_v36  ;;  %v639_v4 = vpop.eup %638 }
 0x2dc   :  { %v334_v61 = vpack.c.bf16 %v328_v60, %v328_v60  ;;  %v329_v5 = vmul.f32 %v639_v4, %v625_v37 }
 0x2dd   :  { %v336_v3 = vpack.c.bf16 %v330_v0, %v330_v0 }
 0x2de   :  { %584 = vmatmul.msk.bf16.vlgmr.msra.gmra.mxu0 %vm264_vm1, %v334_v61  ;;  %v335_v8 = vpack.c.bf16 %v329_v5, %v329_v5 }
 0x2e5   :  { %v444_v1 = vpop.permute.xlu0 %443 }
 0x2e6   :  { %v449_v2 = vsel %vm342_vm2, %v444_v1, 0 }
 0x2e7   :  { %458 = vmatpush.bf16.msrb.mxu2 %v449_v2 }
 0x2ea   :  { %586 = vmatmul.msk.bf16.vlgmr.msrb.gmra.mxu2 %vm264_vm1, %v336_v3 }
 0x2ed   :  { %v423_v6 = vpop.permute.xlu0 %422 }
 0x2ee   :  { %v428_v7 = vsel %vm342_vm2, %v423_v6, 0 }
 0x2ef   :  { %437 = vmatpush.bf16.msrb.mxu1 %v428_v7 }
 0x2f2   :  { %585 = vmatmul.msk.bf16.vlgmr.msrb.gmra.mxu1 %vm264_vm1, %v335_v8 }
 0x315   :  { %v355_v12 = vpop.f32.mrf.mxu1 }
 0x319   :  { %v376_v13 = vpop.f32.mrf.mxu2 }
 0x31a   :  { %v464_v10 = vpack.c.bf16 %v376_v13, %v355_v12 }
 0x31c   :  { %595 = vmatmul.msk.bf16.vlgmr.msra.gmra.mxu3 %vm56_vm0, %v464_v10 }
 0x31d   :  { %v357_v14 = vpop.f32.mrf.mxu1 }
 0x321   :  { %v378_v17 = vpop.f32.mrf.mxu2 }
 0x359   :  { %v397_v18 = vpop.f32.mrf.mxu3 }
 0x35b   :  { %v418_v19 = vpop.f32.mrf.mxu0 }
 0x35c   :  { %v465_v20 = vpack.c.bf16 %v418_v19, %v397_v18 }
 0x35e   :  { %596 = vmatmul.msk.bf16.gmra.mxu3 %vm56_vm0, %v465_v20 }
 0x361   :  { %v399_v21 = vpop.f32.mrf.mxu3 }
 0x363   :  { %v420_v22 = vpop.f32.mrf.mxu0 }
 0x36d   :  { %v460_v23 = vpop.f32.mrf.mxu2 }
 0x36f   :  { %v439_v24 = vpop.f32.mrf.mxu1 }
 0x370   :  { %v466_v25 = vpack.c.bf16 %v460_v23, %v439_v24 }
 0x372   :  { %597 = vmatmul.msk.bf16.gmra.mxu3 %vm56_vm0, %v466_v25 }
 0x375   :  { %v462_v27 = vpop.f32.mrf.mxu2 }
 0x377   :  { %v441_v29 = vpop.f32.mrf.mxu1 }
 0x39f   :  { %v501_v32 = vpop.f32.mrf.mxu3 }
 0x3a0   :  { %v522_v33 = vadd.f32 %v516_v31, %v501_v32 }
 0x3a2   :  { %528 = vst.msk [vmem:[#allocation2] sm:$0xff] %vm56_vm0, %v522_v33 }
 0x3a7   :  { %v503_v35 = vpop.f32.mrf.mxu3 }
 0x3a8   :  { %v523_v36 = vadd.f32 %v517_v34, %v503_v35 }
 0x3aa   :  { %529 = vst.msk [vmem:[#allocation2 + $0x8] sm:$0xff] %vm56_vm0, %v523_v36 }
 0x3e1   :  { %v506_v37 = vpop.f32.mrf.mxu3 }
 0x3e2   :  { %v524_v38 = vadd.f32 %v518_v16, %v506_v37 }
 0x3e4   :  { %530 = vst.msk [vmem:[#allocation2 + $0x10] sm:$0xff] %vm56_vm0, %v524_v38 }
 0x3e9   :  { %v508_v40 = vpop.f32.mrf.mxu3 }
 0x3ea   :  { %v525_v41 = vadd.f32 %v519_v39, %v508_v40 }
 0x3ec   :  { %531 = vst.msk [vmem:[#allocation2 + $0x18] sm:$0xff] %vm56_vm0, %v525_v41 }
 0x3f5   :  { %v511_v44 = vpop.f32.mrf.mxu3 }
 0x3f6   :  { %v526_v45 = vadd.f32 %v520_v43, %v511_v44 }
 0x3f8   :  { %532 = vst.msk [vmem:[#allocation2 + $0x20] sm:$0xff] %vm56_vm0, %v526_v45 }
 0x3fd   :  { %v513_v47 = vpop.f32.mrf.mxu3 }
 0x3fe   :  { %v527_v48 = vadd.f32 %v521_v46, %v513_v47 }
 0x400   :  { %533 = vst.msk [vmem:[#allocation2 + $0x28] sm:$0xff] %vm56_vm0, %v527_v48 }
 0x401   :  { %546 = dma.vmem_to_hbm [thread:$0]  %s539_s21, 768, %s541_s24, [#allocation3], %s669_s2, %s669_s2, %s670_s0  }
 0x402   :  { %664 = dma.done.wait [#allocation3], 768  }
 0x403   :  { %665 = vsyncadd [#allocation3], 4294966528 }
 0x404   :  { %551 = vsyncpa [#allocation3], 1 }

</bundles_post_ra>
